<compile_context>
chip_gen: v7x
topology: tpu7x:2x2x1
jax: 0.10.0
libtpu: 0.0.40
codegen_flags: <defaults>
</compile_context>

<pallas_src>
import jax
import jax.numpy as jnp
import numpy as np
from jax.experimental import pallas as pl
from jax.experimental.pallas import tpu as pltpu

HIDDEN = 32     # hidden_size
OUTPUT = 64     # output_size (vocab)
MAX_LEN = 8     # max_length

H, V, L = HIDDEN, OUTPUT, MAX_LEN
LANE = 128
OUT_PAD = LANE - OUTPUT - HIDDEN - MAX_LEN   # 24 zero lanes in the packed output row

# weight-slab column blocks (each 128 lanes wide, lane-tile aligned)
#   [0:128]   Wx  = [wa_x | wc_x | 0]
#   [128:256] Wh  = [wa_h | whr | whz | whn | 0]
#   [256:384] Wg  = [wir | wiz | win | 0]
#   [384:512] Wo  = [wo | 0]
#   [512:640] Wca = [wc_a | 0]
XB, HB, GB, OB, CB = 0, 128, 256, 384, 512


def attn_decoder_kernel(tok_ref,                       # scalar prefetch (SMEM): (T,) int32
                        emb_ref, enc_ref, h0_ref, w_ref, b_ref,   # VMEM-resident inputs
                        out_ref,                        # (1, 1, 128) per-step packed output
                        h_sc, encca_sc):                # VMEM scratch carried across steps
    f32 = jnp.float32
    t = pl.program_id(0)

    # ---- once per sequence: init carried hidden, precompute enc @ Wca -------
    @pl.when(t == 0)
    def _():
        h_sc[...] = h0_ref[...]
        encca_sc[...] = jnp.dot(enc_ref[...], w_ref[:, CB:CB + LANE],
                                preferred_element_type=f32)          # (L, 128)

    # ---- in-kernel embedding gather + carried hidden ------------------------
    tok = tok_ref[t]
    emb = emb_ref[pl.ds(tok, 1), :]                                   # (1, H)
    h = h_sc[...]                                                     # (1, H)

    # ---- one packed MXU dot covers both the x-path and the h-path -----------
    # rows [embedded; hidden] x [Wx | Wh]  ->  (2, 256); keep the two diagonal
    # quadrants: row0/cols0:128 = x@Wx, row1/cols128:256 = h@Wh.
    xh_in = jnp.concatenate([emb, h], axis=0)                         # (2, H)
    xh = jnp.dot(xh_in, w_ref[:, XB:GB], preferred_element_type=f32)  # (2, 256)
    xr = xh[0:1, 0:LANE] + b_ref[0:1, :]          # [x@wa_x | x@wc_x + bc | 0]
    hr = xh[1:2, LANE:2 * LANE] + b_ref[1:2, :]   # [h@wa_h+ba | h@whr+bhr | h@whz+bhz | h@whn+bhn | 0]

    # ---- attn_weights = softmax(attn(cat(embedded, hidden))) ----------------
    logits = xr[:, 0:L] + hr[:, 0:L]                                  # (1, L)
    m = jnp.max(logits, axis=-1, keepdims=True)
    e = jnp.exp(logits - m)
    attw = e / jnp.sum(e, axis=-1, keepdims=True)   # exact division (1e-5 parity)

    # ---- attn_applied @ Wca folded as attw @ (enc @ Wca), one MXU dot -------
    ca = jnp.dot(attw, encca_sc[...], preferred_element_type=f32)     # (1, 128)

    # ---- attn_combine(cat(embedded, attn_applied)) then ReLU ----------------
    g = jnp.maximum(xr[:, L:L + H] + ca[:, 0:H], 0.0)                 # (1, H) GRU input

    # ---- single-step GRU (PyTorch gate order r, z, n), one packed g-dot -----
    gr = jnp.dot(g, w_ref[:, GB:OB], preferred_element_type=f32) + b_ref[2:3, :]
    r = jax.nn.sigmoid(gr[:, 0:H] + hr[:, L:L + H])
    z = jax.nn.sigmoid(gr[:, H:2 * H] + hr[:, L + H:L + 2 * H])
    n = jnp.tanh(gr[:, 2 * H:3 * H] + r * hr[:, L + 2 * H:L + 3 * H])
    h_new = (1.0 - z) * n + z * h

    # ---- output = log_softmax(out(h_new)) -----------------------------------
    o = (jnp.dot(h_new, w_ref[:, OB:CB], preferred_element_type=f32)
         + b_ref[3:4, :])[:, 0:V]
    mo = jnp.max(o, axis=-1, keepdims=True)
    s = o - mo
    logp = s - jnp.log(jnp.sum(jnp.exp(s), axis=-1, keepdims=True))

    # ---- carry hidden + one lane-dense packed store per step ----------------
    h_sc[...] = h_new
    out_ref[...] = jnp.concatenate(
        [logp, h_new, attw, jnp.zeros((1, OUT_PAD), f32)], axis=-1
    ).reshape(1, 1, LANE)


def make_params(key):
    """Deterministic synthetic parameters (PyTorch-style uniform init)."""
    ks = iter(jax.random.split(key, 32))

    def u(shape, fan_in):
        b = 1.0 / np.sqrt(fan_in)
        return jax.random.uniform(next(ks), shape, jnp.float32, -b, b)

    p = {}
    p["embedding"] = jax.random.normal(next(ks), (V, H), jnp.float32)
    # attn: Linear(2H -> L); split [emb ; hidden] halves of the weight
    p["wa_x"], p["wa_h"] = u((H, L), 2 * H), u((H, L), 2 * H)
    p["ba"] = u((1, L), 2 * H)
    # attn_combine: Linear(2H -> H); split [emb ; attn_applied]
    p["wc_x"], p["wc_a"] = u((H, H), 2 * H), u((H, H), 2 * H)
    p["bc"] = u((1, H), 2 * H)
    # GRU(H, H): input-to-hidden and hidden-to-hidden, gate order r, z, n
    for name in ("wir", "wiz", "win", "whr", "whz", "whn"):
        p[name] = u((H, H), H)
    for name in ("bir", "biz", "bin", "bhr", "bhz", "bhn"):
        p[name] = u((1, H), H)
    # out: Linear(H -> V)
    p["wo"] = u((H, V), H)
    p["bo"] = u((1, V), H)
    return p


def pack_params(p):
    """One-time packing of all weights/biases into lane-dense VMEM slabs."""
    def padc(a):
        return jnp.pad(a, ((0, 0), (0, LANE - a.shape[1])))

    wx = padc(jnp.concatenate([p["wa_x"], p["wc_x"]], axis=1))
    wh = padc(jnp.concatenate([p["wa_h"], p["whr"], p["whz"], p["whn"]], axis=1))
    wg = padc(jnp.concatenate([p["wir"], p["wiz"], p["win"]], axis=1))
    wo = padc(p["wo"])
    wca = padc(p["wc_a"])
    w_slab = jnp.concatenate([wx, wh, wg, wo, wca], axis=1)          # (H, 640)

    bx = padc(jnp.concatenate([jnp.zeros((1, L), jnp.float32), p["bc"]], axis=1))
    bh = padc(jnp.concatenate([p["ba"], p["bhr"], p["bhz"], p["bhn"]], axis=1))
    bg = padc(jnp.concatenate([p["bir"], p["biz"], p["bin"]], axis=1))
    bo = padc(p["bo"])
    b_slab = jnp.concatenate([bx, bh, bg, bo], axis=0)               # (4, 128)
    return w_slab, b_slab, p["embedding"]


def attn_decoder_decode(tokens, hidden, encoder_outputs, packed):
    """Run T decoder steps (teacher-forced token sequence) in ONE pallas_call.

    Per step this is exactly the module's forward; the hidden state is carried
    in VMEM scratch, weights stay VMEM-resident across the whole sequence.
    Returns (logp (T,V), hidden (T,H), attn_weights (T,L)).
    """
    w_slab, b_slab, emb_table = packed
    tokens = jnp.asarray(tokens, jnp.int32)
    T = tokens.shape[0]
    h0 = hidden.reshape(1, H).astype(jnp.float32)

    out = pl.pallas_call(
        attn_decoder_kernel,
        out_shape=jax.ShapeDtypeStruct((T, 1, LANE), jnp.float32),
        grid_spec=pltpu.PrefetchScalarGridSpec(
            num_scalar_prefetch=1,                       # tokens -> SMEM
            grid=(T,),
            in_specs=[
                pl.BlockSpec((V, H), lambda t, tok: (0, 0)),          # embedding table (resident)
                pl.BlockSpec((L, H), lambda t, tok: (0, 0)),          # encoder outputs (resident)
                pl.BlockSpec((1, H), lambda t, tok: (0, 0)),          # initial hidden
                pl.BlockSpec((H, 5 * LANE), lambda t, tok: (0, 0)),   # weight slab (resident)
                pl.BlockSpec((4, LANE), lambda t, tok: (0, 0)),       # bias slab (resident)
            ],
            out_specs=pl.BlockSpec((1, 1, LANE), lambda t, tok: (t, 0, 0)),
            scratch_shapes=[
                pltpu.VMEM((1, H), jnp.float32),      # carried hidden state
                pltpu.VMEM((L, LANE), jnp.float32),   # enc @ Wca (computed at step 0)
            ],
        ),
        compiler_params=pltpu.CompilerParams(
            dimension_semantics=("arbitrary",)),      # sequential: hidden carried across steps
    )(tokens, emb_table, encoder_outputs.astype(jnp.float32), h0, w_slab, b_slab)

    out = out.reshape(T, LANE)
    logp = out[:, 0:V]
    h_all = out[:, V:V + H]
    attw = out[:, V + H:V + H + L]
    return logp, h_all, attw


def attn_decoder_forward(token, hidden, encoder_outputs, packed):
    """Single-step call matching the PyTorch module's forward signature."""
    tokens = jnp.reshape(jnp.asarray(token, jnp.int32), (1,))
    logp, h_all, attw = attn_decoder_decode(tokens, hidden, encoder_outputs, packed)
    # match PyTorch return shapes: (1, V), (1, 1, H), (1, L)
    return logp[0:1], h_all[0:1].reshape(1, 1, H), attw[0:1]


def reference_forward(token, hidden, encoder_outputs, p):
    emb = p["embedding"][token].reshape(1, H)
    h = hidden.reshape(1, H)
    logits = emb @ p["wa_x"] + h @ p["wa_h"] + p["ba"]
    attw = jax.nn.softmax(logits, axis=-1)
    applied = attw @ encoder_outputs
    g = jax.nn.relu(emb @ p["wc_x"] + applied @ p["wc_a"] + p["bc"])
    r = jax.nn.sigmoid(g @ p["wir"] + p["bir"] + h @ p["whr"] + p["bhr"])
    z = jax.nn.sigmoid(g @ p["wiz"] + p["biz"] + h @ p["whz"] + p["bhz"])
    n = jnp.tanh(g @ p["win"] + p["bin"] + r * (h @ p["whn"] + p["bhn"]))
    h_new = (1.0 - z) * n + z * h
    logp = jax.nn.log_softmax(h_new @ p["wo"] + p["bo"], axis=-1)
    return logp, h_new.reshape(1, 1, H), attw


if __name__ == "__main__":
    key = jax.random.PRNGKey(0)
    kp, ke, kt = jax.random.split(key, 3)
    params = make_params(kp)
    packed = pack_params(params)

    hidden0 = jnp.zeros((1, 1, H), jnp.float32)                 # initHidden()
    encoder_outputs = jax.random.normal(ke, (L, H), jnp.float32)
    tokens = jax.random.randint(kt, (L,), 0, V, jnp.int32)      # teacher-forced decode inputs

    # ---- multi-step decode: one kernel launch, weights stay VMEM-resident ----
    logp, h_all, attw = attn_decoder_decode(tokens, hidden0, encoder_outputs, packed)
    jax.block_until_ready((logp, h_all, attw))

    # ---- reference: T sequential applications of the module's forward --------
    h = hidden0
    r_logp, r_h, r_attw = [], [], []
    for t in range(L):
        lp, h, aw = reference_forward(tokens[t], h, encoder_outputs, params)
        r_logp.append(lp)
        r_h.append(h.reshape(1, H))
        r_attw.append(aw)
    r_logp = jnp.concatenate(r_logp, axis=0)
    r_h = jnp.concatenate(r_h, axis=0)
    r_attw = jnp.concatenate(r_attw, axis=0)

    assert np.allclose(np.asarray(logp), np.asarray(r_logp), atol=1e-5)
    assert np.allclose(np.asarray(h_all), np.asarray(r_h), atol=1e-5)
    assert np.allclose(np.asarray(attw), np.asarray(r_attw), atol=1e-5)

    # ---- single-step parity with the original module forward signature -------
    lp1, h1, aw1 = attn_decoder_forward(tokens[0], hidden0, encoder_outputs, packed)
    s_logp, s_h, s_attw = reference_forward(tokens[0], hidden0, encoder_outputs, params)
    assert np.allclose(np.asarray(lp1), np.asarray(s_logp), atol=1e-5)
    assert np.allclose(np.asarray(h1), np.asarray(s_h), atol=1e-5)
    assert np.allclose(np.asarray(aw1), np.asarray(s_attw), atol=1e-5)

    print("KERNEL_OK")
</pallas_src>

<mosaic_0001>
module attributes {stable_mosaic.version = 11 : i64} {
  func.func @attn_decoder_kernel(%arg0: i32, %arg1: memref<8xi32, #tpu.memory_space<smem>>, %arg2: memref<64x32xf32, #tpu.memory_space<vmem>>, %arg3: memref<8x32xf32, #tpu.memory_space<vmem>>, %arg4: memref<1x32xf32, #tpu.memory_space<vmem>>, %arg5: memref<32x640xf32, #tpu.memory_space<vmem>>, %arg6: memref<4x128xf32, #tpu.memory_space<vmem>>, %arg7: memref<1x1x128xf32, #tpu.memory_space<vmem>>, %arg8: memref<1x32xf32, #tpu.memory_space<vmem>>, %arg9: memref<8x128xf32, #tpu.memory_space<vmem>>) attributes {dimension_semantics = [#tpu.dimension_semantics<arbitrary>], iteration_bounds = array<i64: 8>, scalar_prefetch = 1 : i64, scratch_operands = 2 : i64, tpu.core_type = #tpu.core_type<tc>, window_params = [{pipeline_mode = #tpu.pipeline_mode<synchronous>, transform_indices = @transform_0, window_bounds = array<i64: 64, 32>}, {pipeline_mode = #tpu.pipeline_mode<synchronous>, transform_indices = @transform_1, window_bounds = array<i64: 8, 32>}, {pipeline_mode = #tpu.pipeline_mode<synchronous>, transform_indices = @transform_2, window_bounds = array<i64: 1, 32>}, {pipeline_mode = #tpu.pipeline_mode<synchronous>, transform_indices = @transform_3, window_bounds = array<i64: 32, 640>}, {pipeline_mode = #tpu.pipeline_mode<synchronous>, transform_indices = @transform_4, window_bounds = array<i64: 4, 128>}, {transform_indices = @transform_5, window_bounds = array<i64: 1, 1, 128>}]} {
    %c0_i32 = arith.constant 0 : i32
    %0 = arith.cmpi eq, %arg0, %c0_i32 : i32
    %1 = arith.extui %0 : i1 to i32
    %c0_i32_0 = arith.constant 0 : i32
    %2 = arith.cmpi ne, %1, %c0_i32_0 : i32
    scf.if %2 {
      %c0_31 = arith.constant 0 : index
      %c0_32 = arith.constant 0 : index
      %86 = vector.load %arg4[%c0_31, %c0_32] : memref<1x32xf32, #tpu.memory_space<vmem>>, vector<1x32xf32>
      %c0_33 = arith.constant 0 : index
      %c0_34 = arith.constant 0 : index
      %87 = vector.load %arg8[%c0_33, %c0_34] : memref<1x32xf32, #tpu.memory_space<vmem>>, vector<1x32xf32>
      tpu.vector_store %arg8[%c0_33, %c0_34], %86 {strides = array<i32>} : memref<1x32xf32, #tpu.memory_space<vmem>>, vector<1x32xf32>,
      %c0_35 = arith.constant 0 : index
      %c0_36 = arith.constant 0 : index
      %88 = vector.load %arg3[%c0_35, %c0_36] : memref<8x32xf32, #tpu.memory_space<vmem>>, vector<8x32xf32>
      %c0_37 = arith.constant 0 : index
      %c512 = arith.constant 512 : index
      %89 = vector.load %arg5[%c0_37, %c512] : memref<32x640xf32, #tpu.memory_space<vmem>>, vector<32x128xf32>
      %cst_38 = arith.constant dense<0.000000e+00> : vector<8x128xf32>
      %90 = tpu.matmul %88, %89, %cst_38 {dimension_numbers = #tpu.dot_dimension_numbers<[1], [0], [0], [1], [0, 0, 1, 1], [], []>} : vector<8x32xf32>, vector<32x128xf32>, vector<8x128xf32> -> vector<8x128xf32>
      %c0_39 = arith.constant 0 : index
      %c0_40 = arith.constant 0 : index
      %91 = vector.load %arg9[%c0_39, %c0_40] : memref<8x128xf32, #tpu.memory_space<vmem>>, vector<8x128xf32>
      tpu.vector_store %arg9[%c0_39, %c0_40], %90 {strides = array<i32>} : memref<8x128xf32, #tpu.memory_space<vmem>>, vector<8x128xf32>,
    } else {
    }
    %3 = arith.index_cast %arg0 : i32 to index
    %4 = memref.load %arg1[%3] : memref<8xi32, #tpu.memory_space<smem>>
    %5 = arith.index_cast %4 : i32 to index
    %c0 = arith.constant 0 : index
    %6 = vector.load %arg2[%5, %c0] : memref<64x32xf32, #tpu.memory_space<vmem>>, vector<1x32xf32>
    %c0_1 = arith.constant 0 : index
    %c0_2 = arith.constant 0 : index
    %7 = vector.load %arg8[%c0_1, %c0_2] : memref<1x32xf32, #tpu.memory_space<vmem>>, vector<1x32xf32>
    %8 = tpu.concatenate %6, %7 in 0 : vector<1x32xf32>, vector<1x32xf32> -> vector<2x32xf32>
    %c0_3 = arith.constant 0 : index
    %c0_4 = arith.constant 0 : index
    %9 = vector.load %arg5[%c0_3, %c0_4] : memref<32x640xf32, #tpu.memory_space<vmem>>, vector<32x256xf32>
    %cst = arith.constant dense<0.000000e+00> : vector<2x256xf32>
    %10 = tpu.matmul %8, %9, %cst {dimension_numbers = #tpu.dot_dimension_numbers<[1], [0], [0], [1], [0, 0, 1, 1], [], []>} : vector<2x32xf32>, vector<32x256xf32>, vector<2x256xf32> -> vector<2x256xf32>
    %11 = vector.extract_strided_slice %10 {offsets = [0, 0], sizes = [1, 128], strides = [1, 1]} : vector<2x256xf32> to vector<1x128xf32>
    %c0_5 = arith.constant 0 : index
    %c0_6 = arith.constant 0 : index
    %12 = vector.load %arg6[%c0_5, %c0_6] : memref<4x128xf32, #tpu.memory_space<vmem>>, vector<1x128xf32>
    %13 = arith.addf %11, %12 : vector<1x128xf32>
    %14 = vector.extract_strided_slice %10 {offsets = [1, 128], sizes = [1, 128], strides = [1, 1]} : vector<2x256xf32> to vector<1x128xf32>
    %c1 = arith.constant 1 : index
    %c0_7 = arith.constant 0 : index
    %15 = vector.load %arg6[%c1, %c0_7] : memref<4x128xf32, #tpu.memory_space<vmem>>, vector<1x128xf32>
    %16 = arith.addf %14, %15 : vector<1x128xf32>
    %17 = vector.extract_strided_slice %13 {offsets = [0, 0], sizes = [1, 8], strides = [1, 1]} : vector<1x128xf32> to vector<1x8xf32>
    %18 = vector.extract_strided_slice %16 {offsets = [0, 0], sizes = [1, 8], strides = [1, 1]} : vector<1x128xf32> to vector<1x8xf32>
    %19 = arith.addf %17, %18 : vector<1x8xf32>
    %cst_8 = arith.constant dense<0xFF800000> : vector<1xf32>
    %20 = vector.multi_reduction <maximumf>, %19, %cst_8 [1] : vector<1x8xf32> to vector<1xf32>
    %21 = vector.shape_cast %20 : vector<1xf32> to vector<1x1xf32>
    %22 = vector.broadcast %21 : vector<1x1xf32> to vector<1x8xf32>
    %23 = arith.subf %19, %22 : vector<1x8xf32>
    %24 = math.exp %23 : vector<1x8xf32>
    %cst_9 = arith.constant dense<0.000000e+00> : vector<1xf32>
    %25 = vector.multi_reduction <add>, %24, %cst_9 [1] : vector<1x8xf32> to vector<1xf32>
    %26 = vector.shape_cast %25 : vector<1xf32> to vector<1x1xf32>
    %27 = vector.broadcast %26 : vector<1x1xf32> to vector<1x8xf32>
    %28 = arith.divf %24, %27 : vector<1x8xf32>
    %c0_10 = arith.constant 0 : index
    %c0_11 = arith.constant 0 : index
    %29 = vector.load %arg9[%c0_10, %c0_11] : memref<8x128xf32, #tpu.memory_space<vmem>>, vector<8x128xf32>
    %cst_12 = arith.constant dense<0.000000e+00> : vector<1x128xf32>
    %30 = tpu.matmul %28, %29, %cst_12 {dimension_numbers = #tpu.dot_dimension_numbers<[1], [0], [0], [1], [0, 0, 1, 1], [], []>} : vector<1x8xf32>, vector<8x128xf32>, vector<1x128xf32> -> vector<1x128xf32>
    %31 = vector.extract_strided_slice %13 {offsets = [0, 8], sizes = [1, 32], strides = [1, 1]} : vector<1x128xf32> to vector<1x32xf32>
    %32 = vector.extract_strided_slice %30 {offsets = [0, 0], sizes = [1, 32], strides = [1, 1]} : vector<1x128xf32> to vector<1x32xf32>
    %33 = arith.addf %31, %32 : vector<1x32xf32>
    %cst_13 = arith.constant 0.000000e+00 : f32
    %34 = vector.broadcast %cst_13 : f32 to vector<1x32xf32>
    %35 = arith.maximumf %33, %34 : vector<1x32xf32>
    %c0_14 = arith.constant 0 : index
    %c256 = arith.constant 256 : index
    %36 = vector.load %arg5[%c0_14, %c256] : memref<32x640xf32, #tpu.memory_space<vmem>>, vector<32x128xf32>
    %cst_15 = arith.constant dense<0.000000e+00> : vector<1x128xf32>
    %37 = tpu.matmul %35, %36, %cst_15 {dimension_numbers = #tpu.dot_dimension_numbers<[1], [0], [0], [1], [0, 0, 1, 1], [], []>} : vector<1x32xf32>, vector<32x128xf32>, vector<1x128xf32> -> vector<1x128xf32>
    %c2 = arith.constant 2 : index
    %c0_16 = arith.constant 0 : index
    %38 = vector.load %arg6[%c2, %c0_16] : memref<4x128xf32, #tpu.memory_space<vmem>>, vector<1x128xf32>
    %39 = arith.addf %37, %38 : vector<1x128xf32>
    %40 = vector.extract_strided_slice %39 {offsets = [0, 0], sizes = [1, 32], strides = [1, 1]} : vector<1x128xf32> to vector<1x32xf32>
    %41 = vector.extract_strided_slice %16 {offsets = [0, 8], sizes = [1, 32], strides = [1, 1]} : vector<1x128xf32> to vector<1x32xf32>
    %42 = arith.addf %40, %41 : vector<1x32xf32>
    %43 = arith.negf %42 : vector<1x32xf32>
    %44 = math.exp %43 : vector<1x32xf32>
    %cst_17 = arith.constant 1.000000e+00 : f32
    %45 = vector.broadcast %cst_17 : f32 to vector<1x32xf32>
    %46 = arith.addf %45, %44 : vector<1x32xf32>
    %47 = arith.divf %45, %46 : vector<1x32xf32>
    %48 = vector.extract_strided_slice %39 {offsets = [0, 32], sizes = [1, 32], strides = [1, 1]} : vector<1x128xf32> to vector<1x32xf32>
    %49 = vector.extract_strided_slice %16 {offsets = [0, 40], sizes = [1, 32], strides = [1, 1]} : vector<1x128xf32> to vector<1x32xf32>
    %50 = arith.addf %48, %49 : vector<1x32xf32>
    %51 = arith.negf %50 : vector<1x32xf32>
    %52 = math.exp %51 : vector<1x32xf32>
    %cst_18 = arith.constant 1.000000e+00 : f32
    %53 = vector.broadcast %cst_18 : f32 to vector<1x32xf32>
    %54 = arith.addf %53, %52 : vector<1x32xf32>
    %55 = arith.divf %53, %54 : vector<1x32xf32>
    %56 = vector.extract_strided_slice %39 {offsets = [0, 64], sizes = [1, 32], strides = [1, 1]} : vector<1x128xf32> to vector<1x32xf32>
    %57 = vector.extract_strided_slice %16 {offsets = [0, 72], sizes = [1, 32], strides = [1, 1]} : vector<1x128xf32> to vector<1x32xf32>
    %58 = arith.mulf %47, %57 : vector<1x32xf32>
    %59 = arith.addf %56, %58 : vector<1x32xf32>
    %60 = math.tanh %59 : vector<1x32xf32>
    %cst_19 = arith.constant 1.000000e+00 : f32
    %61 = vector.broadcast %cst_19 : f32 to vector<1x32xf32>
    %62 = arith.subf %61, %55 : vector<1x32xf32>
    %63 = arith.mulf %62, %60 : vector<1x32xf32>
    %64 = arith.mulf %55, %7 : vector<1x32xf32>
    %65 = arith.addf %63, %64 : vector<1x32xf32>
    %c0_20 = arith.constant 0 : index
    %c384 = arith.constant 384 : index
    %66 = vector.load %arg5[%c0_20, %c384] : memref<32x640xf32, #tpu.memory_space<vmem>>, vector<32x128xf32>
    %cst_21 = arith.constant dense<0.000000e+00> : vector<1x128xf32>
    %67 = tpu.matmul %65, %66, %cst_21 {dimension_numbers = #tpu.dot_dimension_numbers<[1], [0], [0], [1], [0, 0, 1, 1], [], []>} : vector<1x32xf32>, vector<32x128xf32>, vector<1x128xf32> -> vector<1x128xf32>
    %c3 = arith.constant 3 : index
    %c0_22 = arith.constant 0 : index
    %68 = vector.load %arg6[%c3, %c0_22] : memref<4x128xf32, #tpu.memory_space<vmem>>, vector<1x128xf32>
    %69 = arith.addf %67, %68 : vector<1x128xf32>
    %70 = vector.extract_strided_slice %69 {offsets = [0, 0], sizes = [1, 64], strides = [1, 1]} : vector<1x128xf32> to vector<1x64xf32>
    %cst_23 = arith.constant dense<0xFF800000> : vector<1xf32>
    %71 = vector.multi_reduction <maximumf>, %70, %cst_23 [1] : vector<1x64xf32> to vector<1xf32>
    %72 = vector.shape_cast %71 : vector<1xf32> to vector<1x1xf32>
    %73 = vector.broadcast %72 : vector<1x1xf32> to vector<1x64xf32>
    %74 = arith.subf %70, %73 : vector<1x64xf32>
    %75 = math.exp %74 : vector<1x64xf32>
    %cst_24 = arith.constant dense<0.000000e+00> : vector<1xf32>
    %76 = vector.multi_reduction <add>, %75, %cst_24 [1] : vector<1x64xf32> to vector<1xf32>
    %77 = vector.shape_cast %76 : vector<1xf32> to vector<1x1xf32>
    %78 = math.log %77 : vector<1x1xf32>
    %79 = vector.broadcast %78 : vector<1x1xf32> to vector<1x64xf32>
    %80 = arith.subf %74, %79 : vector<1x64xf32>
    %c0_25 = arith.constant 0 : index
    %c0_26 = arith.constant 0 : index
    %81 = vector.load %arg8[%c0_25, %c0_26] : memref<1x32xf32, #tpu.memory_space<vmem>>, vector<1x32xf32>
    tpu.vector_store %arg8[%c0_25, %c0_26], %65 {strides = array<i32>} : memref<1x32xf32, #tpu.memory_space<vmem>>, vector<1x32xf32>,
    %cst_27 = arith.constant 0.000000e+00 : f32
    %82 = vector.broadcast %cst_27 : f32 to vector<1x24xf32>
    %83 = tpu.concatenate %80, %65, %28, %82 in 1 : vector<1x64xf32>, vector<1x32xf32>, vector<1x8xf32>, vector<1x24xf32> -> vector<1x128xf32>
    %84 = vector.shape_cast %83 : vector<1x128xf32> to vector<1x1x128xf32>
    %c0_28 = arith.constant 0 : index
    %c0_29 = arith.constant 0 : index
    %c0_30 = arith.constant 0 : index
    %85 = vector.load %arg7[%c0_28, %c0_29, %c0_30] : memref<1x1x128xf32, #tpu.memory_space<vmem>>, vector<1x1x128xf32>
    tpu.vector_store %arg7[%c0_28, %c0_29, %c0_30], %84 {strides = array<i32>} : memref<1x1x128xf32, #tpu.memory_space<vmem>>, vector<1x1x128xf32>,
    return
  }
  func.func @transform_0(%arg0: i32, %arg1: memref<8xi32, #tpu.memory_space<smem>>) -> (i32, i32) {
    %c0_i32 = arith.constant 0 : i32
    %c0_i32_0 = arith.constant 0 : i32
    %c0_i32_1 = arith.constant 0 : i32
    return %c0_i32, %c0_i32_0 : i32, i32
  }
  func.func @transform_1(%arg0: i32, %arg1: memref<8xi32, #tpu.memory_space<smem>>) -> (i32, i32) {
    %c0_i32 = arith.constant 0 : i32
    %c0_i32_0 = arith.constant 0 : i32
    %c0_i32_1 = arith.constant 0 : i32
    return %c0_i32, %c0_i32_0 : i32, i32
  }
  func.func @transform_2(%arg0: i32, %arg1: memref<8xi32, #tpu.memory_space<smem>>) -> (i32, i32) {
    %c0_i32 = arith.constant 0 : i32
    %c0_i32_0 = arith.constant 0 : i32
    %c0_i32_1 = arith.constant 0 : i32
    return %c0_i32, %c0_i32_0 : i32, i32
  }
  func.func @transform_3(%arg0: i32, %arg1: memref<8xi32, #tpu.memory_space<smem>>) -> (i32, i32) {
    %c0_i32 = arith.constant 0 : i32
    %c0_i32_0 = arith.constant 0 : i32
    %c0_i32_1 = arith.constant 0 : i32
    return %c0_i32, %c0_i32_0 : i32, i32
  }
  func.func @transform_4(%arg0: i32, %arg1: memref<8xi32, #tpu.memory_space<smem>>) -> (i32, i32) {
    %c0_i32 = arith.constant 0 : i32
    %c0_i32_0 = arith.constant 0 : i32
    %c0_i32_1 = arith.constant 0 : i32
    return %c0_i32, %c0_i32_0 : i32, i32
  }
  func.func @transform_5(%arg0: i32, %arg1: memref<8xi32, #tpu.memory_space<smem>>) -> (i32, i32, i32) {
    %c0_i32 = arith.constant 0 : i32
    %c0_i32_0 = arith.constant 0 : i32
    %c0_i32_1 = arith.constant 0 : i32
    return %arg0, %c0_i32, %c0_i32_0 : i32, i32, i32
  }
}

</mosaic_0001>

<bundles_post_ra>
// kernel: tpu_custom_call.1
= control target key start
LH: loop header
LB: loop body
LE: loop exit
PB: predicated region body
PF: predicated region fallthrough
CT: control target
= control target key end

     0   :  { %s1314_s0 = inlined_call_operand.vmem [shape: s32[8], index: 0, kind: input, shape index: {}]   ;;  %s1315_s1 = inlined_call_operand.vmem [shape: f32[64,32], index: 1, kind: input, shape index: {}]   ;;  %s1316_s2 = inlined_call_operand.vmem [shape: f32[8,32], index: 2, kind: input, shape index: {}]   ;;  %s1317_s3 = inlined_call_operand.vmem [shape: f32[1,32], index: 3, kind: input, shape index: {}]   ;;  %s1318_s4 = inlined_call_operand.hbm [shape: f32[32,640], index: 4, kind: input, shape index: {}]   ;;  %s1319_s5 = inlined_call_operand.vmem [shape: f32[4,128], index: 5, kind: input, shape index: {}]   ;;  %s1320_s6 = inlined_call_operand.hbm [shape: f32[8,1,128], index: 6, kind: output, shape index: {}]  }
   0x1   :  { %s11_s23 = sshll.u32 %s1314_s0, 4  ;;  %s12_s23 = int_to_ptr.vmem [resolvable:$true] %s11_s23 }
   0x2   :  { %s975_s24 = scalar_lea.vmem %s12_s23, 16  ;;  %p980_p1 = scmp.lt.s32.totalorder %s12_s23, %s12_s23 }
   0x3   :  { %p976_p0 = scmp.ne.s32.totalorder %s12_s23, %s975_s24  ;;  %p981_p2 = scmp.lt.s32.totalorder %s975_s24, %s975_s24 }
   0x5   :  { %p982_p3 = por %p981_p2, %p980_p1 }
   0x7   :  { %p983_p4 = pnand %p982_p3, %p976_p0 }
   0x9   :  { %986 = shalt.err (!%p983_p4)  }
   0xa   :  { %s1085_s25 = smov [#allocation5]  }
   0xb   :  { %14 = dma.vmem_to_smem %s12_s23, 16, %s1085_s25, [#allocation4] }
   0xc   :  { %1059 = dma.done.wait [#allocation4], 16 }
   0xd   :  { %1060 = vsyncadd [#allocation4], 4294967280 }
   0xe   :  { %16 = sfence }
   0xf   :  { %17 = vsyncpa [#allocation7], 0 }
  0x10   :  { %18 = vsyncpa [#allocation8], 0 }
  0x11   :  { %20 = vsyncpa [#allocation8 + $0x1], 0  ;;  %s1140_s26 = smov 0   ;;  %s1142_s27 = smov 0  }
  0x12   :  { %s1144_s0 = smov 0   ;;  %s1146_s28 = smov 0  }
  0x13 LB: > { %s1161_s29 = sadd.s32 4294967295, %s1083_s28   ;;  %s799_s30 = sadd.s32 4294967294, %s1083_s28   ;;  %s1083_s28 = sphi %s1146_s28, %s1337_s28   ;;  %s1079_s0 = sphi %s1144_s0, %s1336_s0   ;;  %s1075_s27 = sphi %s1142_s27, %s1335_s27   ;;  %s1071_s26 = sphi %s1140_s26, %s1334_s26  }
  0x14   : > { %s1165_s7 = sadd.s32 1, %s1083_s28   ;;  %s138_s8 = sadd.s32 1, %s1079_s0 }
  0x15   : > { %s135_s9 = ssub.s32 %s1083_s28, %s1165_s7  ;;  %p148_p5 = scmp.ne.s32.totalorder %s1079_s0, %s1075_s27 }
  0x16   : > { %p136_p6 = scmp.eq.s32.totalorder %s135_s9, 0  ;;  %p149_p7 = scmp.eq.s32.totalorder %s1161_s29, 7 }
  0x17   : > { %p154_p8 = scmp.ne.s32.totalorder %s1075_s27, %s1071_s26  ;;  %p155_p9 = scmp.eq.s32.totalorder %s799_s30, 7 }
  0x18   : > { %s1176_s10 = scalar_select %p136_p6, %s1079_s0, %s138_s8  }
  0x19   : > { %p1178_p10 = por %p149_p7, %p148_p5  ;;  %p1182_p11 = por %p155_p9, %p154_p8 }
  0x1a   : > { %p800_p12 = scmp.ge.s32.totalorder %s1083_s28, 1  ;;  %p162_p13 = scmp.lt.s32.totalorder %s1083_s28, 9 }
  0x1b   : > { %s1324_s11 = scalar_select %p1178_p10, 1, 0 }
  0x1c   : > { %s1325_s12 = scalar_select %p1182_p11, 1, 0 }
  0x1d   : > { %p1321_p1 = scmp.eq.s32.totalorder %s1161_s29, 0  ;;  %p1190_p2 = pnand %p800_p12, %p162_p13 }
  0x1e   : > { %s1086_s14 = smov [#allocation6]   ;;  %s987_s19 = scalar_lea.hbm %s1318_s4, 2560 }
  0x1f   : > { %s1326_s13 = scalar_select %p1190_p2, 1, 0 }
  0x20   : > { %s183_s15 = sshll.u32 %s1086_s14, 4  ;;  %p902_p3 = pneg %p1190_p2  ;;  %s184_s15 = int_to_ptr.vmem [resolvable:$true] %s183_s15 }
  0x21   : > { %p988_p5 = scmp.ne.s32.totalorder %s1318_s4, %s987_s19  ;;  %p994_p9 = scmp.lt.u32.totalorder %s987_s19, %s1318_s4 }
  0x22   : > { %p1198_p4 = pnand %p1321_p1, %p902_p3 }
  0x24   : > { %p989_p6 = pneg %p1198_p4 }
  0x26   : > { %p990_p7 = pnand %p989_p6, %p988_p5 }
  0x28   : > { %p991_p8 = pneg %p990_p7 }
  0x2a   : > { %p996_p12 = pnand %p994_p9, %p991_p8 }
  0x2c   : > { %999 = shalt.err (!%p996_p12)
}
  0x2d   : > { %s1000_s24 = scalar_lea.vmem %s184_s15, 2560  ;;  %p1008_p1 = scmp.lt.s32.totalorder %s184_s15, %s184_s15 }
  0x2e   : > { %p1001_p13 = scmp.ne.s32.totalorder %s184_s15, %s1000_s24  ;;  %p1009_p11 = scmp.lt.s32.totalorder %s1000_s24, %s1000_s24 }
  0x30   : > { %p1003_p3 = pnand %p1001_p13, %p989_p6  ;;  %p1010_p10 = por %p1009_p11, %p1008_p1 }
  0x32   : > { %p1004_p0 = pneg %p1003_p3 }
  0x34   : > { %p1011_p2 = pnand %p1010_p10, %p1004_p0 }
  0x36   : > { %1014 = shalt.err (!%p1011_p2)
}
  0x37   : > { %s1087_s25 = smov 640   ;;  %s1088_s30 = smov 40  }
  0x38   : > { %905 = dma.hbm_to_vmem [thread:$0]  (!%p1198_p4), %s1318_s4, 2560, %s184_s15, [#allocation7], %s1087_s25, %s1087_s25, %s1088_s30  }
  0x39   : > { %p1328_p5 = scmp.ne.s32.totalorder %s1326_s13, 0 }
  0x3a   : > { %p1329_p7 = scmp.eq.s32.totalorder (!%p1328_p5), %s1161_s29, 0 }
  0x3b   : > { %202 = sbr.rel (%p1328_p5) target bundleno = 2439 (0x987), region = 40 }
  0x42   : > { %1062 = dma.done.wait (%p1329_p7), [#allocation7], 2560   ;;  %p1330_p6 = pmov %p1329_p7 }
  0x43   : > { %s222_s14 = sand.u32 1, %s1075_s27   ;;  %p1331_p10 = scmp.ne.s32.totalorder %s1161_s29, 0 }
  0x44   : > { %1064 = vsyncadd (%p1330_p6), [#allocation7], 4294964736  ;;  %s1227_s17 = scalar_lea.vmem [#allocation9], %s222_s14  ;;  %v228_v0 = vld [vmem:[%s1317_s3] sm:$0x1] (!%p1331_p10)  ;;  %vm229_vm0 = vcmask (!%p1331_p10), 253952  }
  0x45   : > { %227 = sbr.rel (%p1331_p10) target bundleno = 292 (0x124), region = 48  ;;  %v232_v1 = vld [vmem:[#allocation6 + $0x20] sm:$0xff] (!%p1331_p10)  ;;  %v233_v2 = vld [vmem:[#allocation6 + $0x48] sm:$0xff] (!%p1331_p10)  ;;  %230 = vst.msk [vmem:[#allocation2] sm:$0x1] (!%p1331_p10), %vm229_vm0, %v228_v0  ;;  %v1089_v3 = vmov (!%p1331_p10), 0.0|0.0  }
  0x46   : > { %870 = vmatprep.subr.bf16.mxu0 (!%p1331_p10), %v1089_v3  ;;  %v871_v4 = vpack.c.bf16 (!%p1331_p10), %v233_v2, %v232_v1  ;;  %v234_v5 = vld [vmem:[#allocation6 + $0x70] sm:$0xff] (!%p1331_p10)  ;;  %v235_v6 = vld [vmem:[#allocation6 + $0x98] sm:$0xff] (!%p1331_p10)  ;;  %vm1090_vm1 = vmmov (!%p1331_p10), 0   ;;  %v1091_v7 = vmov (!%p1331_p10), 0.0   ;;  %vm236_vm2 = vcmask (!%p1331_p10), 261120  }
  0x47   : > { %840 = vmatprep.mubr.msk.f32.mxu0 (!%p1331_p10), %vm1090_vm1, %v1091_v7  ;;  %v874_v8 = vpack.c.bf16 (!%p1331_p10), %v235_v6, %v234_v5  ;;  %v231_v9 = vld [vmem:[%s1316_s2] sm:$0xff] (!%p1331_p10) }
  0x48   : > { %872 = vmatpush3.bf16.msra.mxu0 (!%p1331_p10), %v871_v4 }
  0x49   : > { %873 = vmatprep.subr.bf16.mxu0 (!%p1331_p10), %v1089_v3 }
  0x4c   : > { %875 = vmatpush3.bf16.msra.mxu0 %v874_v8 }
  0x4f   : > { %841 = vmatmul.mubr.msk.f32.vlgmr.msra.gmra.mrb[0].mxu0 %vm236_vm2, %v231_v9 }
 0x122   : > { %v306_v10 = vpop.f32.mrb[0].mxu0 }
 0x123   : > { %310 = vst [vmem:[#allocation3] sm:$0xff] %v306_v10  ;;  %v842_v11 = vpop.f32.mrb[1].mxu0 }
 0x124 PF: > { %v324_v12 = vld [vmem:[#allocation6 + $0x8] sm:$0xff]  ;;  %v326_v13 = vld [vmem:[#allocation6 + $0x30] sm:$0xff]  ;;  %v323_v14 = vld [vmem:[#allocation6] sm:$0xff]  ;;  %s311_s19 = sld [smem:[#allocation5 + %s1161_s29]]  ;;  %v1092_v19 = vmov 0.0   ;;  %vm321_vm3 = vcmask 1040384  }
 0x125   : > { %v876_v15 = vpack.c.bf16 %v326_v13, %v324_v12  ;;  %v325_v16 = vld [vmem:[#allocation6 + $0x28] sm:$0xff]  ;;  %v328_v17 = vld [vmem:[#allocation6 + $0x58] sm:$0xff]  ;;  %v330_v18 = vld [vmem:[#allocation6 + $0x80] sm:$0xff]  ;;  %399 = vmatprep.mubr.f32.mxu0 %v1092_v19  ;;  %843 = vmatprep.subr.mxu1 %v1092_v19  ;;  %vm331_vm4 = vcmask 261120   ;;  %vm417_vm5 = vcmask 57344   ;;  %vm1093_vm6 = vmmov 0  }
 0x126   : > { %v878_v20 = vpack.c.bf16 %v325_v16, %v323_v14  ;;  %v880_v21 = vpack.c.bf16 %v330_v18, %v328_v17  ;;  %v327_v22 = vld [vmem:[#allocation6 + $0x50] sm:$0xff]  ;;  %v329_v23 = vld [vmem:[#allocation6 + $0x78] sm:$0xff]  ;;  %845 = vmatprep.mubr.msk.f32.mxu1 %vm1093_vm6, %v1092_v19  ;;  %s1094_s8 = smov 120   ;;  %vm430_vm7 = vcmask 64512   ;;  %v512_v49 = vld [vmem:[#allocation6 + $0x60] sm:$0xff]  ;;  %v1095_v50 = vmov 0.0|0.0  }
 0x127   : > { %877 = vmatprep.subr.bf16.mxu0 %v876_v15  ;;  %v882_v24 = vpack.c.bf16 %v329_v23, %v327_v22  ;;  %v1238_v25 = vld [vmem:[#allocation2] ss:$0 sm:$0xff]  ;;  %v408_v28 = vld [vmem:[%s1319_s5 + $0x1] sm:$0x1]  ;;  %v513_v52 = vld [vmem:[#allocation6 + $0x88] sm:$0xff]  ;;  %s1096_s9 = smov 8  }
 0x128   : > { %879 = vmatpush1.bf16.msra.mxu0 %v878_v20  ;;  %v410_v29 = vrot.slane %v408_v28, 7  ;;  %v406_v31 = vld [vmem:[%s1319_s5] sm:$0x1]  ;;  %v511_v48 = vld [vmem:[#allocation6 + $0x38] sm:$0xff]  ;;  %v888_v53 = vpack.c.bf16 %v513_v52, %v512_v49  ;;  %s1097_s16 = smov 56   ;;  %s1098_s18 = smov 64  }
 0x129   : > { %881 = vmatprep.subr.bf16.mxu0 %v880_v21  ;;  %v510_v47 = vld [vmem:[#allocation6 + $0x10] sm:$0xff]  ;;  %v514_v60 = vld [vmem:[%s1319_s5 + $0x2] sm:$0x1]  ;;  %v622_v11 = vld [vmem:[#allocation6 + $0x40] sm:$0xff]  ;;  %s1100_s20 = smov 32   ;;  %vm715_vm8 = vcmask 253952  }
 0x12a   : > { %s312_s22 = scalar_lea.vmem %s1315_s1, %s311_s19  ;;  %v429_v43 = vld [vmem:[#allocation3] sm:$0xff]  ;;  %v885_v51 = vpack.c.bf16 %v511_v48, %v510_v47  ;;  %v623_v12 = vld [vmem:[#allocation6 + $0x68] sm:$0xff]  ;;  %v624_v14 = vld [vmem:[#allocation6 + $0x90] sm:$0xff]  ;;  %s1099_s19 = smov 96   ;;  %vm701_vm9 = vcmask 516096   ;;  %vm723_vm10 = vcmask 523264  }
 0x12b   : > { %v313_v26 = vld [vmem:[%s312_s22] sm:$0x1]  ;;  %844 = vmatpush3.msra.mxu1 %v429_v43  ;;  %v621_v10 = vld [vmem:[#allocation6 + $0x18] sm:$0xff]  ;;  %v894_v15 = vpack.c.bf16 %v624_v14, %v623_v12  ;;  %vm725_vm11 = vcmask 785408   ;;  %s812_s23 = sshll.u32 %s1161_s29, 4  ;;  %s743_s24 = sshll.u32 %s1227_s17, 4  ;;  %s1271_s24 = int_to_ptr.vmem [resolvable:$true] %s743_s24 }
 0x12c   : > { %883 = vmatpush1.bf16.msra.mxu0 %v882_v24  ;;  %v322_v27 = vsel %vm321_vm3, %v313_v26, %v1238_v25  ;;  %884 = vmatprep.subr.bf16.mxu1 %v1095_v50  ;;  %v891_v13 = vpack.c.bf16 %v622_v11, %v621_v10  ;;  %v625_v24 = vld [vmem:[%s1319_s5 + $0x3] sm:$0x1]  ;;  %vm727_vm12 = vcmask 850944   ;;  %s731_s29 = scalar_lea.sflag [#allocation8], %s222_s14  ;;  %p1332_p0 = scmp.ne.s32.totalorder %s1324_s11, 0 }
 0x12d   : > { %890 = vmatprep.subr.bf16.mxu0 %v1095_v50 }
 0x12f   : > { %807 = vmatmul.mubr.msk.f32.vlgmr.msra.gmra.mrb[0].mxu0 %vm331_vm4, %v322_v27 }
 0x130   : > { %867 = vmatprep.mubr.msk.f32.mxu0 %vm1093_vm6, %v1092_v19  ;;  %892 = vmatpush3.bf16.msra.mxu0 %v891_v13 }
 0x131   : > { %893 = vmatprep.subr.bf16.mxu0 %v1095_v50 }
 0x134   : > { %895 = vmatpush3.bf16.msra.mxu0 %v894_v15 }
 0x202   : > { %v401_v30 = vpop.f32.mrb[0].mxu0 }
 0x203   : > { %v403_v32 = vpop.f32.mrb[1].mxu0  ;;  %v407_v34 = vadd.f32 %v406_v31, %v401_v30 }
 0x204   : > { %v412_v33 = vadd.f32 %v410_v29, %v403_v32 }
 0x206   : > { %v414_v35 = vrot.slane %v412_v33, 1 }
 0x208   : > { %v416_v36 = vadd.f32 %v414_v35, %v407_v34 }
 0x20a   : > { %v418_v37 = vsel %vm417_vm5, %v416_v36, -inf }
 0x20b   : > { %419 = vmax.xlane.f32.xlu0 %v418_v37 }
 0x298   : > { %v420_v38 = vpop.xlane.xlu0 %419 }
 0x299   : > { %v421_v39 = vsub.f32 %v416_v36, %v420_v38 }
 0x29b   : > { %v422_v40 = vmul.f32 1.442695, %v421_v39 }
 0x29d   : > { %961 = vpow2.f32 %v422_v40 }
 0x2a7   : > { %v962_v41 = vpop.eup %961 }
 0x2a8   : > { %v424_v42 = vsel %vm417_vm5, %v962_v41, 0.0 }
 0x2a9   : > { %425 = vadd.xlane.f32.xlu0 %v424_v42 }
 0x2bf   : > { %590 = vrot.lane.b32.xlu0 %v414_v35, %s1094_s8 }
 0x336   : > { %v426_v44 = vpop.xlane.xlu0 %425 }
 0x337   : > { %963 = vrcp.f32 %v426_v44 }
 0x33a   : > { %v591_v0 = vpop.permute.xlu0 %590 }
 0x341   : > { %v964_v45 = vpop.eup %963 }
 0x342   : > { %v1251_v46 = vmul.f32 %v964_v45, %v962_v41 }
 0x344   : > { %846 = vmatmul.mubr.msk.f32.vlgmr.msra.gmra.mrb[0].mxu1 %vm430_vm7, %v1251_v46 }
 0x345   : > { %856 = vmatprep.mubr.msk.f32.mxu1 %vm1093_vm6, %v1092_v19  ;;  %886 = vmatpush3.bf16.msra.mxu1 %v885_v51 }
 0x346   : > { %887 = vmatprep.subr.bf16.mxu1 %v1095_v50 }
 0x349   : > { %889 = vmatpush3.bf16.msra.mxu1 %v888_v53 }
 0x417   : > { %v500_v54 = vpop.f32.mrb[0].mxu1 }
 0x418   : > { %505 = vrot.lane.b32.xlu1 %v500_v54, %s1096_s9  ;;  %v847_v55 = vpop.f32.mrb[1].mxu1  ;;  %s1015_s9 = scalar_lea.vmem %s1271_s24, 16 }
 0x419   : > { %p1016_p11 = scmp.ne.s32.totalorder %s1271_s24, %s1015_s9 }
 0x41b   : > { %p1017_p1 = pnand %p1016_p11, %p1332_p0 }
 0x41d   : > { %p1018_p2 = pneg %p1017_p1 }
 0x48a   : > { %v506_v56 = vpop.permute.xlu1 %505 }
 0x48b   : > { %v508_v57 = vadd.f32 %v506_v56, %v407_v34 }
 0x48d   : > { %v509_v58 = vmax.f32 %v508_v57, 0.0 }
 0x48f   : > { %516 = vrot.lane.b32.xlu1 %v509_v58, %s1094_s8  ;;  %s1269_s8 = scalar_lea.hbm %s1320_s6, %s812_s23 }
 0x493   : > { %600 = vrot.lane.b32.xlu1 %v414_v35, %s1097_s16  ;;  %s1101_s16 = smov [#allocation9]  }
 0x494   : > { %s1019_s15 = sshll.u32 %s1101_s16, 4  ;;  %s1020_s15 = int_to_ptr.vmem [resolvable:$false] %s1019_s15 }
 0x495   : > { %s1021_s13 = scalar_lea.vmem %s1020_s15, 32  ;;  %p1022_p4 = scmp.lt.s32.totalorder %s1271_s24, %s1020_s15 }
 0x496   : > { %p1023_p8 = scmp.lt.s32.totalorder %s1021_s13, %s1015_s9 }
 0x498   : > { %p1024_p9 = por %p1023_p8, %p1022_p4 }
 0x49a   : > { %p1025_p12 = pnand %p1024_p9, %p1018_p2 }
 0x501   : > { %v517_v59 = vpop.permute.xlu1 %516 }
 0x502   : > { %857 = vmatmul.mubr.msk.f32.vlgmr.msra.gmra.mrb[2].mxu1 %vm331_vm4, %v517_v59 }
 0x505   : > { %v601_v6 = vpop.permute.xlu1 %600 }
 0x5d5   : > { %v586_v61 = vpop.f32.mrb[2].mxu1 }
 0x5d6   : > { %v587_v62 = vadd.f32 %v586_v61, %v514_v60  ;;  %v858_v63 = vpop.f32.mrb[3].mxu1 }
 0x5d8   : > { %v593_v1 = vadd.f32 %v591_v0, %v587_v62 }
 0x5da   : > { %v810_v2 = vmul.f32 -1.442695, %v593_v1 }
 0x5dc   : > { %965 = vpow2.f32 %v810_v2 }
 0x5e6   : > { %v966_v3 = vpop.eup %965 }
 0x5e7   : > { %v597_v4 = vadd.f32 1.0, %v966_v3 }
 0x5e9   : > { %967 = vrcp.f32 %v597_v4 }
 0x5f3   : > { %v968_v5 = vpop.eup %967 }
 0x5f4   : > { %v603_v7 = vmul.f32 %v968_v5, %v601_v6  ;;  %v610_v18 = vsub.f32 1.0, %v968_v5 }
 0x5f6   : > { %605 = vrot.lane.b32.xlu1 %v603_v7, %s1098_s18 }
 0x668   : > { %v606_v8 = vpop.permute.xlu1 %605 }
 0x669   : > { %v608_v9 = vadd.f32 %v606_v8, %v587_v62 }
 0x66b   : > { %969 = vtanh.f32 %v608_v9 }
 0x675   : > { %v970_v16 = vpop.eup %969 }
 0x676   : > { %612 = vrot.lane.b32.xlu1 %v970_v16, %s1099_s19 }
 0x67a   : > { %616 = vrot.lane.b32.xlu1 %v1238_v25, %s1100_s20 }
 0x6e8   : > { %v613_v17 = vpop.permute.xlu1 %612 }
 0x6e9   : > { %v615_v20 = vmul.f32 %v613_v17, %v610_v18 }
 0x6ec   : > { %v617_v19 = vpop.permute.xlu1 %616 }
 0x6ed   : > { %v619_v21 = vmul.f32 %v968_v5, %v617_v19 }
 0x6ef   : > { %v620_v22 = vadd.f32 %v619_v21, %v615_v20 }
 0x6f1   : > { %627 = vrot.lane.b32.xlu1 %v620_v22, %s1099_s19 }
 0x763   : > { %v628_v23 = vpop.permute.xlu1 %627 }
 0x764   : > { %716 = vst.msk [vmem:[#allocation2] sm:$0x1] %vm715_vm8, %v628_v23  ;;  %868 = vmatmul.mubr.msk.f32.vlgmr.msra.gmra.mrb[2].mxu0 %vm331_vm4, %v628_v23 }
 0x837   : > { %v697_v26 = vpop.f32.mrb[2].mxu0 }
 0x838   : > { %v698_v27 = vadd.f32 %v697_v26, %v625_v24  ;;  %v869_v25 = vpop.f32.mrb[3].mxu0 }
 0x83a   : > { %v702_v28 = vsel %vm701_vm9, %v698_v27, -inf }
 0x83b   : > { %703 = vmax.xlane.f32.xlu1 %v702_v28 }
 0x84c   : > { %720 = vrot.lane.b32.xlu1 %v1251_v46, %s1099_s19 }
 0x8c8   : > { %v704_v29 = vpop.xlane.xlu1 %703 }
 0x8c9   : > { %v705_v30 = vsub.f32 %v698_v27, %v704_v29 }
 0x8cb   : > { %v706_v31 = vmul.f32 1.442695, %v705_v30 }
 0x8cc   : > { %v721_v39 = vpop.permute.xlu1 %720 }
 0x8cd   : > { %971 = vpow2.f32 %v706_v31 }
 0x8d7   : > { %v972_v32 = vpop.eup %971 }
 0x8d8   : > { %v708_v33 = vsel %vm701_vm9, %v972_v32, 0.0 }
 0x8d9   : > { %709 = vadd.xlane.f32.xlu0 %v708_v33 }
 0x8ef   : > { %717 = vrot.lane.b32.xlu0 %v620_v22, %s1100_s20 }
 0x966   : > { %v710_v34 = vpop.xlane.xlu0 %709 }
 0x967   : > { %973 = vlog2.f32 %v710_v34 }
 0x96a   : > { %v718_v38 = vpop.permute.xlu0 %717 }
 0x971   : > { %v974_v35 = vpop.eup %973 }
 0x972   : > { %v712_v36 = vmul.f32 0.6931472, %v974_v35 }
 0x974   : > { %v713_v37 = vsub.f32 %v705_v30, %v712_v36 }
 0x976   : > { %v724_v40 = vsel %vm723_vm10, %v713_v37, %v718_v38 }
 0x977   : > { %v726_v41 = vsel %vm725_vm11, %v724_v40, %v721_v39 }
 0x978   : > { %v728_v42 = vsel %vm727_vm12, %v726_v41, 0.0 }
 0x979   : > { %729 = vst [vmem:[%s1227_s17] sm:$0x1] %v728_v42 }
 0x97a   : > { %1028 = shalt.err (!%p1025_p12)
}
 0x97b   : > { %s1029_s14 = scalar_lea.hbm %s1269_s8, 16  ;;  %s1033_s19 = scalar_lea.hbm %s1320_s6, 128 }
 0x97c   : > { %p1030_p13 = scmp.ne.s32.totalorder %s1269_s8, %s1029_s14  ;;  %p1034_p7 = scmp.lt.u32.totalorder %s1269_s8, %s1320_s6 }
 0x97d   : > { %p1035_p6 = scmp.lt.u32.totalorder %s1033_s19, %s1029_s14  ;;  %p1037_p11 = scmp.lt.u32.totalorder %s1029_s14, %s1269_s8 }
 0x97e   : > { %p1031_p3 = pnand %p1030_p13, %p1332_p0 }
 0x97f   : > { %p1036_p10 = por %p1035_p6, %p1034_p7 }
 0x980   : > { %p1032_p5 = pneg %p1031_p3 }
 0x981   : > { %p1038_p1 = por %p1037_p11, %p1036_p10 }
 0x983   : > { %p1039_p2 = pnand %p1038_p1, %p1032_p5 }
 0x985   : > { %1042 = shalt.err (!%p1039_p2)
}
 0x986   : > { %900 = dma.vmem_to_hbm [thread:$0]  (%p1332_p0), %s1271_s24, 16, %s1269_s8, %s731_s29  }
 0x987 PF: > { %p912_p4 = scmp.ge.s32.totalorder %s1083_s28, 2  ;;  %s755_s22 = sand.u32 1, %s1071_s26  }
 0x988   : > { %p1333_p8 = scmp.ne.s32.totalorder %s1325_s12, 0  ;;  %s756_s23 = scalar_lea.sflag [#allocation8], %s755_s22 }
 0x98a   : > { %p907_p9 = pnand %p912_p4, %p1333_p8 }
 0x98c   : > { %1066 = dma.done.wait (!%p907_p9), %s756_s23, 16  }
 0x98d   : > { %1068 = vsyncadd (!%p907_p9), %s756_s23, 4294967280  ;;  %p23_p12 = scmp.ge.s32.totalorder %s1165_s7, 10   ;;  %s1334_s26 = smov %s1075_s27 }
 0x98e   : > { %s1335_s27 = smov %s1079_s0  ;;  %s1336_s0 = smov %s1176_s10 }
 0x98f   : > { %s1337_s28 = smov %s1165_s7  ;;  %25 = sbr.rel (!%p23_p12) target bundleno = 19 (0x13), region = 82 }
 0x996   :  { %760 = vsyncpa [#allocation7], 1 }
 0x997   :  { %762 = vsyncpa [#allocation7 + $0x1], 1 }
 0x998   :  { %763 = vsyncpa [#allocation8], 1 }
 0x999   :  { %765 = vsyncpa [#allocation8 + $0x1], 1 }

</bundles_post_ra>
